<compile_context>
chip_gen: v5e
topology: v5e:2x2
jax: 0.10.0
libtpu: 0.0.40
codegen_flags: <defaults>
</compile_context>

<pallas_src>
import functools

import jax
import jax.numpy as jnp
from jax.experimental import pallas as pl
from jax.experimental.pallas import tpu as pltpu


_LANE_WIDTHS = (1024, 512, 256, 128)   # candidate slab widths (multiples of 128)
_BLOCK_ELEMS = 1024 * 1024             # ~4 MiB f32 per array per block
_VMEM_LIMIT = 48 * 1024 * 1024         # fits v5e/v6e (128 MiB) and v7x (64 MiB)


def _round_up(x, m):
    return -(-x // m) * m


def _adagrad_kernel(param_ref, grad_ref, accum_ref, out_ref, *, lr, eps):
    # Cast to f32 inside the kernel: inputs stay in native dtype in HBM, so
    # low-precision tensors only move their native byte width over HBM.
    # Compute (a handful of VALU + 2 EUP ops/elem) is fully hidden under DMA.
    p = param_ref[...].astype(jnp.float32)
    g = grad_ref[...].astype(jnp.float32)
    a = accum_ref[...].astype(jnp.float32)
    accum_new = a + g * g
    denom = jnp.sqrt(accum_new) + eps
    upd = p - (lr * g) * pl.reciprocal(denom, approx=False)
    out_ref[...] = upd.astype(out_ref.dtype)


def _adagrad_slab(p2, g2, a2, *, lr, eps, donate_param):
    """Run the kernel over a (rows, W) lane-dense slab (W a multiple of 128)."""
    rows, W = p2.shape
    cap = max(8, _BLOCK_ELEMS // W)      # rows per block at the ~4 MiB target
    if rows <= 8:
        tile_rows = rows                 # block == full dim (legal, tiny tensor)
    else:
        # >=2 blocks so ("parallel",) can shard across both v7x TensorCores;
        # even block count and balanced block sizes.
        nb = max(2, -(-rows // cap))
        if nb % 2:
            nb += 1
        tile_rows = min(rows, _round_up(-(-rows // nb), 8))
    grid = (-(-rows // tile_rows),)      # partial trailing block: stores masked

    spec = pl.BlockSpec((tile_rows, W), lambda i: (i, 0))
    extra = {}
    if donate_param:
        # Only a footprint win (write still happens); use when the caller
        # actually donates the parameter buffer, else XLA inserts a copy.
        extra["input_output_aliases"] = {0: 0}

    return pl.pallas_call(
        functools.partial(_adagrad_kernel, lr=lr, eps=eps),
        out_shape=jax.ShapeDtypeStruct((rows, W), p2.dtype),
        grid=grid,
        in_specs=[spec, spec, spec],
        out_specs=spec,
        compiler_params=pltpu.CompilerParams(
            dimension_semantics=("parallel",),
            vmem_limit_bytes=_VMEM_LIMIT,
        ),
        **extra,
    )(p2, g2, a2)


def _adagrad_jnp(p, g, a, *, lr, eps):
    """Plain-jnp fallback (used for the tiny unaligned tail and as reference)."""
    p32 = p.astype(jnp.float32)
    g32 = g.astype(jnp.float32)
    a32 = a.astype(jnp.float32)
    accum_new = a32 + g32 * g32
    return (p32 - lr * g32 / (jnp.sqrt(accum_new) + eps)).astype(p.dtype)


def adagrad_step(param, grad, accum, *, lr=0.01, eps=1e-10, donate_param=False):
    assert param.shape == grad.shape == accum.shape
    orig_shape = param.shape
    n = param.size
    if n == 0:
        return param

    # Widest lane width that divides n -> zero-copy reshape, no pad, no slice.
    W = next((w for w in _LANE_WIDTHS if n % w == 0), None)

    if W is not None:
        out = _adagrad_slab(
            param.reshape(-1, W), grad.reshape(-1, W), accum.reshape(-1, W),
            lr=lr, eps=eps, donate_param=donate_param)
        return out.reshape(orig_shape)

    # Unaligned element count: kernel on the 1024-aligned prefix, the
    # (<1024-element) tail with plain jnp.  Avoids padding every input in HBM.
    W = _LANE_WIDTHS[0]
    n_main = (n // W) * W
    fp, fg, fa = param.reshape(-1), grad.reshape(-1), accum.reshape(-1)
    pieces = []
    if n_main:
        head = _adagrad_slab(
            fp[:n_main].reshape(-1, W), fg[:n_main].reshape(-1, W),
            fa[:n_main].reshape(-1, W),
            lr=lr, eps=eps, donate_param=False)
        pieces.append(head.reshape(-1))
    pieces.append(_adagrad_jnp(fp[n_main:], fg[n_main:], fa[n_main:], lr=lr, eps=eps))
    return jnp.concatenate(pieces).reshape(orig_shape)
    # TODO(synk): if the caller needs the advanced accumulator state, emit
    # accum_new as a second output; the PyTorch forward only returns the
    # updated param, so we match that here.


if __name__ == "__main__":
    key = jax.random.PRNGKey(0)
    kp, kg, ka = jax.random.split(key, 3)

    shape = (2, 4, 16, 16)  # B, C, H, W  -> 2048 elements (lane-aligned path)
    param = jax.random.normal(kp, shape, dtype=jnp.float32)
    grad = jax.random.normal(kg, shape, dtype=jnp.float32)
    accum = jax.random.uniform(ka, shape, dtype=jnp.float32)  # non-negative state

    out = adagrad_step(param, grad, accum, lr=0.01, eps=1e-10)
    jax.block_until_ready(out)

    ref = _adagrad_jnp(param, grad, accum, lr=0.01, eps=1e-10)
    assert out.shape == shape and out.dtype == jnp.float32
    assert jnp.allclose(out, ref, rtol=1e-6, atol=1e-6), "mismatch vs reference"

    print("KERNEL_OK")
</pallas_src>

<mosaic_0001>
module attributes {stable_mosaic.version = 11 : i64} {
  func.func @_adagrad_kernel(%arg0: i32, %arg1: memref<2x1024xf32, #tpu.memory_space<vmem>>, %arg2: memref<2x1024xf32, #tpu.memory_space<vmem>>, %arg3: memref<2x1024xf32, #tpu.memory_space<vmem>>, %arg4: memref<2x1024xf32, #tpu.memory_space<vmem>>) attributes {dimension_semantics = [#tpu.dimension_semantics<parallel>], iteration_bounds = array<i64: 1>, scalar_prefetch = 0 : i64, scratch_operands = 0 : i64, tpu.core_type = #tpu.core_type<tc>, window_params = [{transform_indices = @transform_0, window_bounds = array<i64: 2, 1024>}, {transform_indices = @transform_1, window_bounds = array<i64: 2, 1024>}, {transform_indices = @transform_2, window_bounds = array<i64: 2, 1024>}, {transform_indices = @transform_3, window_bounds = array<i64: 2, 1024>}]} {
    %c0 = arith.constant 0 : index
    %c0_0 = arith.constant 0 : index
    %0 = vector.load %arg1[%c0, %c0_0] : memref<2x1024xf32, #tpu.memory_space<vmem>>, vector<2x1024xf32>
    %c0_1 = arith.constant 0 : index
    %c0_2 = arith.constant 0 : index
    %1 = vector.load %arg2[%c0_1, %c0_2] : memref<2x1024xf32, #tpu.memory_space<vmem>>, vector<2x1024xf32>
    %c0_3 = arith.constant 0 : index
    %c0_4 = arith.constant 0 : index
    %2 = vector.load %arg3[%c0_3, %c0_4] : memref<2x1024xf32, #tpu.memory_space<vmem>>, vector<2x1024xf32>
    %3 = arith.mulf %1, %1 : vector<2x1024xf32>
    %4 = arith.addf %2, %3 : vector<2x1024xf32>
    %5 = math.sqrt %4 : vector<2x1024xf32>
    %cst = arith.constant 1.000000e-10 : f32
    %6 = vector.broadcast %cst : f32 to vector<2x1024xf32>
    %7 = arith.addf %5, %6 : vector<2x1024xf32>
    %cst_5 = arith.constant 0.00999999977 : f32
    %8 = vector.broadcast %cst_5 : f32 to vector<2x1024xf32>
    %9 = arith.mulf %8, %1 : vector<2x1024xf32>
    %10 = tpu.reciprocal %7 : vector<2x1024xf32> -> vector<2x1024xf32>
    %11 = arith.mulf %9, %10 : vector<2x1024xf32>
    %12 = arith.subf %0, %11 : vector<2x1024xf32>
    %c0_6 = arith.constant 0 : index
    %c0_7 = arith.constant 0 : index
    %13 = vector.load %arg4[%c0_6, %c0_7] : memref<2x1024xf32, #tpu.memory_space<vmem>>, vector<2x1024xf32>
    tpu.vector_store %arg4[%c0_6, %c0_7], %12 {strides = array<i32>} : memref<2x1024xf32, #tpu.memory_space<vmem>>, vector<2x1024xf32>,
    return
  }
  func.func @transform_0(%arg0: i32) -> (i32, i32) {
    %c0_i32 = arith.constant 0 : i32
    %c0_i32_0 = arith.constant 0 : i32
    return %arg0, %c0_i32 : i32, i32
  }
  func.func @transform_1(%arg0: i32) -> (i32, i32) {
    %c0_i32 = arith.constant 0 : i32
    %c0_i32_0 = arith.constant 0 : i32
    return %arg0, %c0_i32 : i32, i32
  }
  func.func @transform_2(%arg0: i32) -> (i32, i32) {
    %c0_i32 = arith.constant 0 : i32
    %c0_i32_0 = arith.constant 0 : i32
    return %arg0, %c0_i32 : i32, i32
  }
  func.func @transform_3(%arg0: i32) -> (i32, i32) {
    %c0_i32 = arith.constant 0 : i32
    %c0_i32_0 = arith.constant 0 : i32
    return %arg0, %c0_i32 : i32, i32
  }
}

</mosaic_0001>

<bundles_post_ra>
// kernel: tpu_custom_call.1
= control target key start
LH: loop header
LB: loop body
LE: loop exit
PB: predicated region body
PF: predicated region fallthrough
CT: control target
= control target key end

     0   :  { %8 = vsyncpa [#allocation3], 0  ;;  %s296_s0 = inlined_call_operand.hbm [shape: f32[2,1024], index: 0, kind: input, shape index: {}]   ;;  %s297_s1 = inlined_call_operand.hbm [shape: f32[2,1024], index: 1, kind: input, shape index: {}]   ;;  %s298_s2 = inlined_call_operand.hbm [shape: f32[2,1024], index: 2, kind: input, shape index: {}]   ;;  %s299_s3 = inlined_call_operand.hbm [shape: f32[2,1024], index: 3, kind: output, shape index: {}]  }
   0x1   :  { %9 = vsyncpa [#allocation6], 0  ;;  %s27_s14 = sshll.u32 %s297_s1, 4  ;;  %s28_s14 = int_to_ptr.hbm [resolvable:$true] %s27_s14 }
   0x2   :  { %10 = vsyncpa [#allocation4], 0  ;;  %s260_s15 = smov [#allocation5]   ;;  %s16_s19 = sshll.u32 %s296_s0, 4  ;;  %s17_s19 = int_to_ptr.hbm [resolvable:$true] %s16_s19 }
   0x3   :  { %s29_s16 = sshll.u32 %s260_s15, 4  ;;  %s261_s20 = smov [#allocation2]   ;;  %s30_s16 = int_to_ptr.vmem [resolvable:$true] %s29_s16 }
   0x4   :  { %32 = dma.hbm_to_vmem [thread:$0]  %s28_s14, 256, %s30_s16, [#allocation6]  }
   0x5   :  { %s18_s21 = sshll.u32 %s261_s20, 4  ;;  %s38_s24 = sshll.u32 %s298_s2, 4  ;;  %s19_s21 = int_to_ptr.vmem [resolvable:$true] %s18_s21  ;;  %s39_s24 = int_to_ptr.hbm [resolvable:$true] %s38_s24 }
   0x6   :  { %21 = dma.hbm_to_vmem [thread:$0]  %s17_s19, 256, %s19_s21, [#allocation3]  }
   0x7   :  { %s262_s1 = smov [#allocation7]  }
   0x8   :  { %s40_s25 = sshll.u32 %s262_s1, 4  ;;  %s41_s25 = int_to_ptr.vmem [resolvable:$true] %s40_s25 }
   0x9   :  { %43 = dma.hbm_to_vmem [thread:$0]  %s39_s24, 256, %s41_s25, [#allocation6]  }
   0xa   :  { %254 = dma.done.wait [#allocation3], 256  }
   0xb   :  { %255 = vsyncadd [#allocation3], 4294967040 }
   0xc   :  { %256 = dma.done.wait [#allocation6], 512  }
   0xd   :  { %257 = vsyncadd [#allocation6], 4294966784  ;;  %v58_v0 = vld [vmem:[#allocation5] sm:$0xff]  ;;  %v60_v1 = vld [vmem:[#allocation7] sm:$0xff]  ;;  %s263_s0 = smov [#allocation8]   ;;  %s135_s28 = sshll.u32 %s299_s3, 4  ;;  %s136_s28 = int_to_ptr.hbm [resolvable:$true] %s135_s28 }
   0xe   :  { %v62_v2 = vmul.f32 %v58_v0, %v58_v0  ;;  %v59_v3 = vld [vmem:[#allocation5 + $0x8] sm:$0xff]  ;;  %v61_v4 = vld [vmem:[#allocation7 + $0x8] sm:$0xff]  ;;  %v92_v43 = vmul.f32 0.01, %v58_v0  ;;  %v56_v49 = vld [vmem:[#allocation2] sm:$0xff]  ;;  %s133_s2 = sshll.u32 %s263_s0, 4  ;;  %s134_s2 = int_to_ptr.vmem [resolvable:$true] %s133_s2 }
   0xf   :  { %v63_v5 = vmul.f32 %v59_v3, %v59_v3  ;;  %v93_v46 = vmul.f32 0.01, %v59_v3  ;;  %v57_v53 = vld [vmem:[#allocation2 + $0x8] sm:$0xff] }
  0x10   :  { %v64_v6 = vadd.f32 %v62_v2, %v60_v1 }
  0x11   :  { %v65_v7 = vadd.f32 %v63_v5, %v61_v4 }
  0x12   :  { %150 = vrsqrt.f32 %v64_v6  ;;  %vm73_vm0 = vcmp.eq.f32.partialorder %v64_v6, inf  ;;  %v76_v19 = vand.u32 2147483648, %v64_v6  ;;  %vm75_vm1 = vcmp.eq.f32.partialorder %v64_v6, 0.0 }
  0x13   :  { %152 = vrsqrt.f32 %v65_v7  ;;  %vm85_vm2 = vcmp.eq.f32.partialorder %v65_v7, inf  ;;  %v88_v22 = vand.u32 2147483648, %v65_v7  ;;  %vm87_vm3 = vcmp.eq.f32.partialorder %v65_v7, 0.0 }
  0x18   :  { %v151_v8 = vpop.eup %150 }
  0x19   :  { %v153_v9 = vpop.eup %152  ;;  %v67_v10 = vmul.f32 %v151_v8, %v64_v6 }
  0x1a   :  { %v79_v11 = vmul.f32 %v153_v9, %v65_v7 }
  0x1b   :  { %v68_v12 = vmul.f32 %v151_v8, %v67_v10 }
  0x1c   :  { %v80_v13 = vmul.f32 %v153_v9, %v79_v11 }
  0x1d   :  { %v69_v14 = vmul.f32 0.5, %v68_v12 }
  0x1e   :  { %v81_v15 = vmul.f32 0.5, %v80_v13 }
  0x1f   :  { %v70_v16 = vsub.f32 1.5, %v69_v14 }
  0x20   :  { %v82_v17 = vsub.f32 1.5, %v81_v15 }
  0x21   :  { %v71_v18 = vmul.f32 %v151_v8, %v70_v16 }
  0x22   :  { %v83_v20 = vmul.f32 %v153_v9, %v82_v17 }
  0x23   :  { %v72_v21 = vmul.f32 %v71_v18, %v64_v6 }
  0x24   :  { %v84_v23 = vmul.f32 %v83_v20, %v65_v7 }
  0x25   :  { %v74_v24 = vsel %vm73_vm0, %v64_v6, %v72_v21 }
  0x26   :  { %v77_v25 = vsel %vm75_vm1, %v76_v19, %v74_v24  ;;  %v86_v26 = vsel %vm85_vm2, %v65_v7, %v84_v23 }
  0x27   :  { %v90_v27 = vadd.f32 1e-10, %v77_v25  ;;  %v89_v28 = vsel %vm87_vm3, %v88_v22, %v86_v26 }
  0x28   :  { %v91_v29 = vadd.f32 1e-10, %v89_v28 }
  0x29   :  { %154 = vrcp.f32 %v90_v27  ;;  %vm99_vm4 = vweird.f32 %v90_v27  ;;  %v105_v33 = vand.u32 2147483648, %v90_v27  ;;  %v103_v36 = vand.u32 2147483647, %v90_v27 }
  0x2a   :  { %156 = vrcp.f32 %v91_v29  ;;  %v119_v37 = vand.u32 2147483648, %v91_v29  ;;  %vm113_vm6 = vweird.f32 %v91_v29  ;;  %v117_v39 = vand.u32 2147483647, %v91_v29 }
  0x2b   :  { %v106_v41 = vor.u32 1.1754944e-38, %v105_v33  ;;  %vm104_vm9 = vcmp.eq.f32.partialorder %v103_v36, 8.507059e+37 }
  0x2c   :  { %v120_v45 = vor.u32 1.1754944e-38, %v119_v37  ;;  %vm118_vm11 = vcmp.eq.f32.partialorder %v117_v39, 8.507059e+37 }
  0x2f   :  { %v155_v30 = vpop.eup %154 }
  0x30   :  { %v157_v31 = vpop.eup %156  ;;  %v95_v32 = vmul.f32 %v155_v30, %v90_v27  ;;  %vm100_vm5 = vweird.f32 %v155_v30 }
  0x31   :  { %v109_v34 = vmul.f32 %v157_v31, %v91_v29  ;;  %vm114_vm7 = vweird.f32 %v157_v31  ;;  %vm101_vm8 = vmor %vm99_vm4, %vm100_vm5 }
  0x32   :  { %v96_v35 = vsub.f32 1.0, %v95_v32  ;;  %vm115_vm10 = vmor %vm113_vm6, %vm114_vm7 }
  0x33   :  { %v110_v38 = vsub.f32 1.0, %v109_v34 }
  0x34   :  { %v97_v40 = vmul.f32 %v155_v30, %v96_v35 }
  0x35   :  { %v111_v42 = vmul.f32 %v157_v31, %v110_v38 }
  0x36   :  { %v98_v44 = vadd.f32 %v155_v30, %v97_v40 }
  0x37   :  { %v112_v47 = vadd.f32 %v157_v31, %v111_v42 }
  0x38   :  { %v102_v48 = vsel %vm101_vm8, %v155_v30, %v98_v44 }
  0x39   :  { %v107_v50 = vsel %vm104_vm9, %v106_v41, %v102_v48  ;;  %v116_v51 = vsel %vm115_vm10, %v157_v31, %v112_v47 }
  0x3a   :  { %v122_v52 = vmul.f32 %v107_v50, %v92_v43  ;;  %v121_v54 = vsel %vm118_vm11, %v120_v45, %v116_v51 }
  0x3b   :  { %v123_v55 = vmul.f32 %v121_v54, %v93_v46 }
  0x3c   :  { %v124_v56 = vsub.f32 %v56_v49, %v122_v52 }
  0x3d   :  { %v125_v57 = vsub.f32 %v57_v53, %v123_v55 }
  0x3e   :  { %126 = vst [vmem:[#allocation8] sm:$0xff] %v124_v56 }
  0x3f   :  { %127 = vst [vmem:[#allocation8 + $0x8] sm:$0xff] %v125_v57 }
  0x40   :  { %138 = dma.vmem_to_hbm [thread:$0]  %s134_s2, 256, %s136_s28, [#allocation4]  }
  0x41   :  { %258 = dma.done.wait [#allocation4], 256  }
  0x42   :  { %259 = vsyncadd [#allocation4], 4294967040 }
  0x43   :  { %143 = vsyncpa [#allocation3], 1 }
  0x44   :  { %144 = vsyncpa [#allocation6], 1 }
  0x45   :  { %145 = vsyncpa [#allocation4], 1 }

</bundles_post_ra>
